<compile_context>
chip_gen: v6e
topology: v6e:2x2x1
jax: 0.10.0
libtpu: 0.0.40
codegen_flags: <defaults>
</compile_context>

<pallas_src>
import jax
import jax.numpy as jnp
from jax.experimental import pallas as pl
from jax.experimental.pallas import tpu as pltpu


def fusion_conv_kernel(xp_ref, xi_ref, wp_ref, wi_ref, scale_ref, shift_ref,
                       o_ref):
    # xp_ref:    (Cp, TN)    point-feature tile (lane axis = length), f32
    # xi_ref:    (Ci, TN)    image-feature tile, f32
    # wp_ref:    (Cout, Cp)  raw conv weight columns for point feats, bf16
    # wi_ref:    (Cout, Ci)  raw conv weight columns for image feats, bf16
    # scale_ref: (Cout, 1)   BN scale  = gamma / sqrt(var + eps), f32
    # shift_ref: (Cout, 1)   BN shift  = beta + scale * (bias - mean), f32
    # o_ref:     (Cout, TN)  bf16 output
    xp = xp_ref[...].astype(jnp.bfloat16)   # in-kernel cast, hidden under DMA
    xi = xi_ref[...].astype(jnp.bfloat16)
    y = jnp.dot(wp_ref[...], xp, preferred_element_type=jnp.float32)
    y = y + jnp.dot(wi_ref[...], xi, preferred_element_type=jnp.float32)
    y = y * scale_ref[...] + shift_ref[...]          # f32 BN epilogue
    o_ref[...] = jnp.maximum(y, 0.0).astype(o_ref.dtype)   # ReLU + downcast


def _pick_tn(n128, batch, cp, ci, cout, in_itemsize, out_itemsize,
             vmem_budget_bytes):
    """Largest TN (multiple of 128, divisor of n128) fitting the VMEM budget,
    preferring configs that keep >= 2 parallel grid tiles (v7x has 2 TCs)."""
    per_col = 2 * ((cp + ci) * in_itemsize + cout * out_itemsize)  # dbl-buf
    budget_cols = max(128, vmem_budget_bytes // per_col)
    best = 128
    for t in range(128, n128 + 1, 128):
        if n128 % t != 0 or t > budget_cols:
            continue
        # Don't collapse the grid below 2 tiles if a smaller TN keeps >= 2.
        if batch * (n128 // t) < 2 and batch * (n128 // best) >= 2:
            continue
        best = t
    return best


def fusion_conv(point_features, img_features, params, *,
                out_dtype=jnp.bfloat16, vmem_budget_bytes=12 * 1024 * 1024):
    """point_features: (B, Cp, N), img_features: (B, Ci, N) -> (B, Cout, N)."""
    w = params["conv_w"].astype(jnp.float32)          # (Cout, Cin)
    b = params["conv_b"].astype(jnp.float32)          # (Cout,)
    gamma = params["bn_gamma"].astype(jnp.float32)
    beta = params["bn_beta"].astype(jnp.float32)
    mean = params["bn_mean"].astype(jnp.float32)
    var = params["bn_var"].astype(jnp.float32)
    eps = 1e-5

    B, Cp, N = point_features.shape
    _, Ci, _ = img_features.shape
    Cout, Cin = w.shape
    assert Cin == Cp + Ci, "conv weight must match Cp + Ci input channels"

    # Eval-mode BN folded into a per-channel f32 scale/shift applied in the
    # kernel's f32 epilogue; raw weights stay bf16 (tiny, resident in VMEM).
    scale = (gamma / jnp.sqrt(var + eps)).reshape(Cout, 1)        # (Cout, 1)
    shift = (beta.reshape(Cout, 1)
             + scale * (b - mean).reshape(Cout, 1))               # (Cout, 1)
    w_p = w[:, :Cp].astype(jnp.bfloat16)                          # (Cout, Cp)
    w_i = w[:, Cp:].astype(jnp.bfloat16)                          # (Cout, Ci)

    # Inputs go in as-is (no wrapper cast -> no extra HBM pass); cast happens
    # inside the kernel.
    xp = point_features
    xi = img_features
    in_itemsize = jnp.dtype(xp.dtype).itemsize
    out_itemsize = jnp.dtype(out_dtype).itemsize

    # Lane-dense length tiling. Common case: N already a multiple of 128 ->
    # pick a divisor, no pad/slice HBM passes. Otherwise pad minimally.
    if N % 128 == 0:
        N_pad = N
    else:
        # TODO(synk): replace this fallback pad/slice with an in-kernel masked
        # tail store for non-128-multiple N.
        N_pad = ((N + 127) // 128) * 128
        pad = ((0, 0), (0, 0), (0, N_pad - N))
        xp = jnp.pad(xp, pad)
        xi = jnp.pad(xi, pad)

    TN = _pick_tn(N_pad, B, Cp, Ci, Cout, in_itemsize, out_itemsize,
                  vmem_budget_bytes)
    grid = (B, N_pad // TN)

    flops = 2 * B * Cout * Cin * N_pad
    bytes_accessed = (B * Cin * N_pad * in_itemsize          # activations in
                      + B * Cout * N_pad * out_itemsize      # output
                      + Cout * Cin * 2 + Cout * 2 * 4)       # weights + BN

    out = pl.pallas_call(
        fusion_conv_kernel,
        out_shape=jax.ShapeDtypeStruct((B, Cout, N_pad), out_dtype),
        grid_spec=pltpu.PrefetchScalarGridSpec(
            num_scalar_prefetch=0,
            grid=grid,
            in_specs=[
                pl.BlockSpec((pl.Squeezed(), Cp, TN), lambda bb, nn: (bb, 0, nn)),
                pl.BlockSpec((pl.Squeezed(), Ci, TN), lambda bb, nn: (bb, 0, nn)),
                pl.BlockSpec((Cout, Cp), lambda bb, nn: (0, 0)),
                pl.BlockSpec((Cout, Ci), lambda bb, nn: (0, 0)),
                pl.BlockSpec((Cout, 1), lambda bb, nn: (0, 0)),
                pl.BlockSpec((Cout, 1), lambda bb, nn: (0, 0)),
            ],
            out_specs=pl.BlockSpec((pl.Squeezed(), Cout, TN),
                                   lambda bb, nn: (bb, 0, nn)),
        ),
        compiler_params=pltpu.CompilerParams(
            dimension_semantics=("parallel", "parallel"),
            vmem_limit_bytes=32 * 1024 * 1024),
        cost_estimate=pl.CostEstimate(flops=flops, transcendentals=0,
                                      bytes_accessed=bytes_accessed),
    )(xp, xi, w_p, w_i, scale, shift)

    if N_pad != N:
        out = out[:, :, :N]
    return out


def _reference(point_features, img_features, params):
    """Pure-JAX f32 reference of the same forward (eval-mode BN)."""
    eps = 1e-5
    x = jnp.concatenate([point_features, img_features], axis=1)   # (B, Cin, N)
    y = jnp.einsum("oc,bcn->bon", params["conv_w"], x) + params["conv_b"][None, :, None]
    y = (y - params["bn_mean"][None, :, None]) / jnp.sqrt(params["bn_var"][None, :, None] + eps)
    y = y * params["bn_gamma"][None, :, None] + params["bn_beta"][None, :, None]
    return jnp.maximum(y, 0.0)


if __name__ == "__main__":
    # Small shapes consistent with the module:
    #   point_features: (B, Cp, N), img_features: (B, Ci, N)
    #   inplanes = Cp + Ci, outplanes = Cout
    B, Cp, Ci, N = 2, 4, 4, 256
    Cin = Cp + Ci
    Cout = 16

    key = jax.random.PRNGKey(0)
    k1, k2, k3, k4, k5, k6 = jax.random.split(key, 6)

    point_features = jax.random.normal(k1, (B, Cp, N), dtype=jnp.float32)
    img_features = jax.random.normal(k2, (B, Ci, N), dtype=jnp.float32)

    # Deterministic parameter init (shapes from Conv1d(Cin, Cout, 1) + BatchNorm1d(Cout)).
    params = {
        "conv_w": 0.1 * jax.random.normal(k3, (Cout, Cin), dtype=jnp.float32),
        "conv_b": 0.05 * jax.random.normal(k4, (Cout,), dtype=jnp.float32),
        "bn_gamma": 1.0 + 0.1 * jax.random.normal(k5, (Cout,), dtype=jnp.float32),
        "bn_beta": 0.1 * jax.random.normal(k6, (Cout,), dtype=jnp.float32),
        "bn_mean": jnp.zeros((Cout,), dtype=jnp.float32),
        "bn_var": jnp.ones((Cout,), dtype=jnp.float32),
    }

    out = fusion_conv(point_features, img_features, params)
    out = jax.block_until_ready(out)

    ref = _reference(point_features, img_features, params)
    assert out.shape == (B, Cout, N)
    assert out.dtype == jnp.bfloat16
    # bf16 activation/weight/output path -> compare against f32 reference with
    # a tolerance comfortably above bf16 rounding error at these magnitudes.
    err = jnp.max(jnp.abs(out.astype(jnp.float32) - ref))
    assert jnp.allclose(out.astype(jnp.float32), ref, atol=2e-2, rtol=2e-2), float(err)

    print("KERNEL_OK")
</pallas_src>

<mosaic_0001>
module attributes {stable_mosaic.version = 11 : i64} {
  func.func @fusion_conv_kernel(%arg0: i32, %arg1: i32, %arg2: memref<1x4x256xf32, #tpu.memory_space<vmem>>, %arg3: memref<1x4x256xf32, #tpu.memory_space<vmem>>, %arg4: memref<16x4xbf16, #tpu.memory_space<vmem>>, %arg5: memref<16x4xbf16, #tpu.memory_space<vmem>>, %arg6: memref<16x1xf32, #tpu.memory_space<vmem>>, %arg7: memref<16x1xf32, #tpu.memory_space<vmem>>, %arg8: memref<1x16x256xbf16, #tpu.memory_space<vmem>>) attributes {dimension_semantics = [#tpu.dimension_semantics<parallel>, #tpu.dimension_semantics<parallel>], iteration_bounds = array<i64: 2, 1>, scalar_prefetch = 0 : i64, scratch_operands = 0 : i64, tpu.core_type = #tpu.core_type<tc>, window_params = [{transform_indices = @transform_0, window_bounds = array<i64: 1, 4, 256>}, {transform_indices = @transform_1, window_bounds = array<i64: 1, 4, 256>}, {pipeline_mode = #tpu.pipeline_mode<synchronous>, transform_indices = @transform_2, window_bounds = array<i64: 16, 4>}, {pipeline_mode = #tpu.pipeline_mode<synchronous>, transform_indices = @transform_3, window_bounds = array<i64: 16, 4>}, {pipeline_mode = #tpu.pipeline_mode<synchronous>, transform_indices = @transform_4, window_bounds = array<i64: 16, 1>}, {pipeline_mode = #tpu.pipeline_mode<synchronous>, transform_indices = @transform_5, window_bounds = array<i64: 16, 1>}, {transform_indices = @transform_6, window_bounds = array<i64: 1, 16, 256>}]} {
    %c0 = arith.constant 0 : index
    %c0_0 = arith.constant 0 : index
    %c0_1 = arith.constant 0 : index
    %0 = vector.load %arg2[%c0, %c0_0, %c0_1] : memref<1x4x256xf32, #tpu.memory_space<vmem>>, vector<1x4x256xf32>
    %1 = vector.shape_cast %0 : vector<1x4x256xf32> to vector<4x256xf32>
    %2 = arith.truncf %1 : vector<4x256xf32> to vector<4x256xbf16>
    %c0_2 = arith.constant 0 : index
    %c0_3 = arith.constant 0 : index
    %c0_4 = arith.constant 0 : index
    %3 = vector.load %arg3[%c0_2, %c0_3, %c0_4] : memref<1x4x256xf32, #tpu.memory_space<vmem>>, vector<1x4x256xf32>
    %4 = vector.shape_cast %3 : vector<1x4x256xf32> to vector<4x256xf32>
    %5 = arith.truncf %4 : vector<4x256xf32> to vector<4x256xbf16>
    %c0_5 = arith.constant 0 : index
    %c0_6 = arith.constant 0 : index
    %6 = vector.load %arg4[%c0_5, %c0_6] : memref<16x4xbf16, #tpu.memory_space<vmem>>, vector<16x4xbf16>
    %cst = arith.constant dense<0.000000e+00> : vector<16x256xf32>
    %7 = tpu.matmul %6, %2, %cst {dimension_numbers = #tpu.dot_dimension_numbers<[1], [0], [0], [1], [0, 0, 1, 1], [], []>} : vector<16x4xbf16>, vector<4x256xbf16>, vector<16x256xf32> -> vector<16x256xf32>
    %c0_7 = arith.constant 0 : index
    %c0_8 = arith.constant 0 : index
    %8 = vector.load %arg5[%c0_7, %c0_8] : memref<16x4xbf16, #tpu.memory_space<vmem>>, vector<16x4xbf16>
    %cst_9 = arith.constant dense<0.000000e+00> : vector<16x256xf32>
    %9 = tpu.matmul %8, %5, %cst_9 {dimension_numbers = #tpu.dot_dimension_numbers<[1], [0], [0], [1], [0, 0, 1, 1], [], []>} : vector<16x4xbf16>, vector<4x256xbf16>, vector<16x256xf32> -> vector<16x256xf32>
    %10 = arith.addf %7, %9 : vector<16x256xf32>
    %c0_10 = arith.constant 0 : index
    %c0_11 = arith.constant 0 : index
    %11 = vector.load %arg6[%c0_10, %c0_11] : memref<16x1xf32, #tpu.memory_space<vmem>>, vector<16x1xf32>
    %12 = vector.broadcast %11 : vector<16x1xf32> to vector<16x256xf32>
    %13 = arith.mulf %10, %12 : vector<16x256xf32>
    %c0_12 = arith.constant 0 : index
    %c0_13 = arith.constant 0 : index
    %14 = vector.load %arg7[%c0_12, %c0_13] : memref<16x1xf32, #tpu.memory_space<vmem>>, vector<16x1xf32>
    %15 = vector.broadcast %14 : vector<16x1xf32> to vector<16x256xf32>
    %16 = arith.addf %13, %15 : vector<16x256xf32>
    %cst_14 = arith.constant 0.000000e+00 : f32
    %17 = vector.broadcast %cst_14 : f32 to vector<16x256xf32>
    %18 = arith.maximumf %16, %17 : vector<16x256xf32>
    %19 = arith.truncf %18 : vector<16x256xf32> to vector<16x256xbf16>
    %c0_15 = arith.constant 0 : index
    %c0_16 = arith.constant 0 : index
    %c0_17 = arith.constant 0 : index
    %20 = vector.load %arg8[%c0_15, %c0_16, %c0_17] : memref<1x16x256xbf16, #tpu.memory_space<vmem>>, vector<1x16x256xbf16>
    %21 = vector.shape_cast %20 : vector<1x16x256xbf16> to vector<16x256xbf16>
    %22 = vector.shape_cast %19 : vector<16x256xbf16> to vector<1x16x256xbf16>
    tpu.vector_store %arg8[%c0_15, %c0_16, %c0_17], %22 {strides = array<i32>} : memref<1x16x256xbf16, #tpu.memory_space<vmem>>, vector<1x16x256xbf16>,
    return
  }
  func.func @transform_0(%arg0: i32, %arg1: i32) -> (i32, i32, i32) {
    %c0_i32 = arith.constant 0 : i32
    %c0_i32_0 = arith.constant 0 : i32
    return %arg0, %c0_i32, %arg1 : i32, i32, i32
  }
  func.func @transform_1(%arg0: i32, %arg1: i32) -> (i32, i32, i32) {
    %c0_i32 = arith.constant 0 : i32
    %c0_i32_0 = arith.constant 0 : i32
    return %arg0, %c0_i32, %arg1 : i32, i32, i32
  }
  func.func @transform_2(%arg0: i32, %arg1: i32) -> (i32, i32) {
    %c0_i32 = arith.constant 0 : i32
    %c0_i32_0 = arith.constant 0 : i32
    %c0_i32_1 = arith.constant 0 : i32
    return %c0_i32, %c0_i32_0 : i32, i32
  }
  func.func @transform_3(%arg0: i32, %arg1: i32) -> (i32, i32) {
    %c0_i32 = arith.constant 0 : i32
    %c0_i32_0 = arith.constant 0 : i32
    %c0_i32_1 = arith.constant 0 : i32
    return %c0_i32, %c0_i32_0 : i32, i32
  }
  func.func @transform_4(%arg0: i32, %arg1: i32) -> (i32, i32) {
    %c0_i32 = arith.constant 0 : i32
    %c0_i32_0 = arith.constant 0 : i32
    %c0_i32_1 = arith.constant 0 : i32
    return %c0_i32, %c0_i32_0 : i32, i32
  }
  func.func @transform_5(%arg0: i32, %arg1: i32) -> (i32, i32) {
    %c0_i32 = arith.constant 0 : i32
    %c0_i32_0 = arith.constant 0 : i32
    %c0_i32_1 = arith.constant 0 : i32
    return %c0_i32, %c0_i32_0 : i32, i32
  }
  func.func @transform_6(%arg0: i32, %arg1: i32) -> (i32, i32, i32) {
    %c0_i32 = arith.constant 0 : i32
    %c0_i32_0 = arith.constant 0 : i32
    return %arg0, %c0_i32, %arg1 : i32, i32, i32
  }
}

</mosaic_0001>

<bundles_post_ra>
// kernel: tpu_custom_call.1
= control target key start
LH: loop header
LB: loop body
LE: loop exit
PB: predicated region body
PF: predicated region fallthrough
CT: control target
= control target key end

     0   :  { %11 = vsyncpa [#allocation3], 0  ;;  %s961_s0 = inlined_call_operand.vmem [shape: f32[2,4,256], index: 0, kind: input, shape index: {}]   ;;  %s962_s1 = inlined_call_operand.vmem [shape: f32[2,4,256], index: 1, kind: input, shape index: {}]   ;;  %s963_s2 = inlined_call_operand.vmem [shape: bf16[16,4], index: 2, kind: input, shape index: {}]   ;;  %s964_s3 = inlined_call_operand.vmem [shape: bf16[16,4], index: 3, kind: input, shape index: {}]   ;;  %s965_s4 = inlined_call_operand.vmem [shape: f32[16,1], index: 4, kind: input, shape index: {}]   ;;  %s966_s5 = inlined_call_operand.vmem [shape: f32[16,1], index: 5, kind: input, shape index: {}]   ;;  %s967_s6 = inlined_call_operand.hbm [shape: bf16[2,16,256], index: 6, kind: output, shape index: {}]  }
   0x1   :  { %13 = vsyncpa [#allocation3 + $0x1], 0  ;;  %s822_s21 = smov 0   ;;  %s824_s22 = smov 0  }
   0x2   :  { %s826_s23 = smov 0   ;;  %s828_s24 = smov 0  }
   0x3   :  { %s830_s25 = smov 0   ;;  %s832_s26 = smov 0  }
   0x4 LB: > { %s613_s27 = sadd.s32 4294967295, %s781_s26   ;;  %s614_s28 = sadd.s32 4294967294, %s781_s26   ;;  %s781_s26 = sphi %s832_s26, %s19_s26   ;;  %s777_s25 = sphi %s830_s25, %s974_s25   ;;  %s773_s24 = sphi %s828_s24, %s973_s24   ;;  %s769_s23 = sphi %s826_s23, %s972_s23   ;;  %s765_s22 = sphi %s824_s22, %s971_s22   ;;  %s761_s21 = sphi %s822_s21, %s970_s21  }
   0x5   : > { %s31_s29 = sadd.s32 1, %s777_s25  ;;  %s180_s30 = sadd.s32 1, %s769_s23 }
   0x6   : > { %p33_p0 = scmp.ge.s32.totalorder %s31_s29, 2  ;;  %p190_p1 = scmp.ne.s32.totalorder %s769_s23, %s765_s22 }
   0x7   : > { %p191_p2 = scmp.eq.s32.totalorder %s613_s27, 1  ;;  %p196_p3 = scmp.ne.s32.totalorder %s765_s22, %s761_s21 }
   0x8   : > { %s976_s29 = smov (%p33_p0, %s31_s29), 0  ;;  %p197_p5 = scmp.eq.s32.totalorder %s614_s28, 1 }
   0x9   : > { %p862_p4 = por %p191_p2, %p190_p1  ;;  %s175_s8 = ssub.s32 %s777_s25, %s976_s29 }
   0xa   : > { %p617_p6 = scmp.ge.s32.totalorder %s781_s26, 1  ;;  %p178_p7 = scmp.eq.s32.totalorder %s175_s8, 0 }
   0xb   : > { %p869_p8 = por %p197_p5, %p196_p3  ;;  %p253_p9 = scmp.lt.s32.totalorder %s781_s26, 3 }
   0xc   : > { %s875_s10 = scalar_select %p178_p7, %s769_s23, %s180_s30  }
   0xd   : > { %p254_p10 = pnand %p617_p6, %p253_p9 }
   0xe   : > { %p297_p11 = scmp.lt.s32.totalorder (!%p254_p10), %s773_s24, 1  ;;  %s293_s17 = sand.u32 (!%p254_p10), 1, %s765_s22  }
   0xf   : > { %257 = sbr.rel (%p254_p10) target bundleno = 257 (0x101), region = 44  ;;  %s618_s18 = sshll.u32 (!%p254_p10), %s293_s17, 4 }
  0x10   : > { %s640_s19 = sshll.u32 (!%p254_p10), %s773_s24, 8  ;;  %s295_s20 = scalar_lea.vmem (!%p254_p10), [#allocation2], %s618_s18 }
  0x11   : > { %s916_s12 = scalar_lea.sflag (!%p254_p10), [#allocation3], %s293_s17  ;;  %s784_s13 = smov (!%p254_p10), [#allocation2]  }
  0x14   : > { %v783_v0 = vmov 0   ;;  %s298_s11 = scalar_select %p297_p11, %s773_s24, 1  ;;  %v450_v1 = vld [vmem:[%s965_s4] sm:$0xff]  ;;  %v451_v3 = vld [vmem:[%s965_s4 + $0x8] sm:$0xff]  ;;  %vm343_vm0 = vcmask 1041408   ;;  %vm339_vm1 = vcmask 31744  }
  0x15   : > { %382 = vmatprep.mubr.bf16.mxu0 %v783_v0  ;;  %439 = vmatprep.mubr.bf16.mxu1 %v783_v0  ;;  %v466_v2 = vld [vmem:[%s966_s5] sm:$0xff]  ;;  %v467_v4 = vld [vmem:[%s966_s5 + $0x8] sm:$0xff] }
  0x16   : > { %699 = vset.pattern.permute.xlu0 %v783_v0  ;;  %700 = vset.pattern.permute.xlu1 %v783_v0  ;;  %s636_s16 = sshll.u32 %s298_s11, 3  ;;  %v703_v15 = vld [vmem:[%s964_s3] sm:$0xff]   ;;  %s709_s11 = sshll.u32 %s784_s13, 4  ;;  %s710_s11 = int_to_ptr.vmem [resolvable:$false] %s709_s11 }
  0x17   : > { %454 = vperm.xlu0 %699, %v450_v1   ;;  %470 = vperm.xlu1 %700, %v466_v2   ;;  %s314_s27 = scalar_lea.vmem %s962_s1, %s636_s16  ;;  %s304_s8 = scalar_lea.vmem %s961_s0, %s636_s16  ;;  %v704_v16 = vld [vmem:[%s963_s2] sm:$0xff]  }
  0x18   : > { %v324_v5 = vld [vmem:[%s314_s27] sm:$0xff]  ;;  %s516_s27 = sshll.u32 %s295_s20, 4  ;;  %s711_s14 = scalar_lea.vmem %s710_s11, 512  ;;  %s912_s27 = int_to_ptr.vmem [resolvable:$true] %s516_s27 }
  0x19   : > { %v318_v6 = vld [vmem:[%s304_s8] sm:$0xff]  ;;  %v326_v7 = vcombine.high %v324_v5, %v324_v5  ;;  %v328_v9 = vpack.c.bf16 %v324_v5, %v324_v5  ;;  %s910_s8 = scalar_lea.hbm %s967_s6, %s640_s19  ;;  %s705_s24 = scalar_lea.vmem %s912_s27, 256 }
  0x1a   : > { %v320_v8 = vcombine.high %v318_v6, %v318_v6  ;;  %v322_v10 = vpack.c.bf16 %v318_v6, %v318_v6  ;;  %p706_p12 = scmp.ne.s32.totalorder %s912_s27, %s705_s24  ;;  %p712_p1 = scmp.lt.s32.totalorder %s912_s27, %s710_s11 }
  0x1b   : > { %459 = vperm.xlu0 %699, %v451_v3   ;;  %475 = vperm.xlu1 %700, %v467_v4   ;;  %v329_v11 = vpack.c.bf16 %v326_v7, %v326_v7  ;;  %v345_v13 = vsel %vm343_vm0, %v328_v9, 0  ;;  %p713_p2 = scmp.lt.s32.totalorder %s711_s14, %s705_s24 }
  0x1c   : > { %v323_v12 = vpack.c.bf16 %v320_v8, %v320_v8  ;;  %v402_v14 = vsel %vm343_vm0, %v322_v10, 0  ;;  %p707_p13 = pnand %p706_p12, %p862_p4 }
  0x1d   : > { %624 = vmatprep.subr.msk.bf16.mxu0 %vm343_vm0, %v329_v11  ;;  %p714_p3 = por %p713_p2, %p712_p1 }
  0x1e   : > { %627 = vmatprep.subr.msk.bf16.mxu1 %vm343_vm0, %v323_v12  ;;  %365 = vmatpush1.bf16.msra.mxu0 %v345_v13  ;;  %p708_p0 = pneg %p707_p13 }
  0x1f   : > { %422 = vmatpush1.bf16.msra.mxu1 %v402_v14 }
  0x20   : > { %p715_p5 = pnand %p714_p3, %p708_p0 }
  0x21   : > { %625 = vmatmul.mubr.msk.bf16.vlgmr.msra.gmra.mxu0 %vm339_vm1, %v703_v15 }
  0x22   : > { %628 = vmatmul.mubr.msk.bf16.vlgmr.msra.gmra.mxu1 %vm339_vm1, %v704_v16 }
  0x92   : > { %v455_v17 = vpop.permute.xlu0 %454  ;;  %v471_v21 = vpop.permute.xlu1 %470 }
  0x96   : > { %v460_v30 = vpop.permute.xlu0 %459  ;;  %v476_v37 = vpop.permute.xlu1 %475 }
  0xe1   : > { %v384_v18 = vpop.f32.mrf.mxu0 }
  0xe2   : > { %v441_v19 = vpop.f32.mrf.mxu1 }
  0xe3   : > { %v442_v20 = vadd.f32 %v441_v19, %v384_v18  ;;  %v386_v22 = vpop.f32.mrf.mxu0 }
  0xe4   : > { %v443_v23 = vpop.f32.mrf.mxu1 }
  0xe5   : > { %v462_v24 = vmul.f32 %v455_v17, %v442_v20  ;;  %v444_v25 = vadd.f32 %v443_v23, %v386_v22  ;;  %v388_v26 = vpop.f32.mrf.mxu0 }
  0xe6   : > { %v445_v27 = vpop.f32.mrf.mxu1 }
  0xe7   : > { %v478_v28 = vadd.f32 %v471_v21, %v462_v24  ;;  %v463_v29 = vmul.f32 %v455_v17, %v444_v25  ;;  %v446_v31 = vadd.f32 %v445_v27, %v388_v26  ;;  %v390_v32 = vpop.f32.mrf.mxu0 }
  0xe8   : > { %v447_v33 = vpop.f32.mrf.mxu1 }
  0xe9   : > { %v479_v34 = vadd.f32 %v471_v21, %v463_v29  ;;  %v464_v35 = vmul.f32 %v460_v30, %v446_v31  ;;  %v448_v36 = vadd.f32 %v447_v33, %v390_v32  ;;  %v482_v38 = vmax.f32 %v478_v28, 0.0 }
  0xeb   : > { %v483_v39 = vmax.f32 %v479_v34, 0.0  ;;  %v480_v40 = vadd.f32 %v476_v37, %v464_v35  ;;  %v465_v41 = vmul.f32 %v460_v30, %v448_v36 }
  0xed   : > { %v638_v42 = vpack.c.bf16 %v483_v39, %v482_v38  ;;  %v481_v43 = vadd.f32 %v476_v37, %v465_v41  ;;  %v484_v44 = vmax.f32 %v480_v40, 0.0 }
  0xef   : > { %498 = vst [vmem:[%s295_s20] sm:$0xff] %v638_v42  ;;  %v485_v45 = vmax.f32 %v481_v43, 0.0 }
  0xf1   : > { %v639_v46 = vpack.c.bf16 %v485_v45, %v484_v44 }
  0xf3   : > { %499 = vst [vmem:[%s295_s20 + $0x8] sm:$0xff] %v639_v46 }
  0xf4   : > { %718 = shalt.err (!%p715_p5)
}
  0xf5   : > { %s719_s15 = scalar_lea.hbm %s910_s8, 256  ;;  %s723_s18 = scalar_lea.hbm %s967_s6, 512 }
  0xf6   : > { %p720_p6 = scmp.ne.s32.totalorder %s910_s8, %s719_s15  ;;  %p724_p10 = scmp.lt.s32.totalorder %s910_s8, %s967_s6 }
  0xf7   : > { %p725_p11 = scmp.lt.s32.totalorder %s723_s18, %s719_s15 }
  0xf8   : > { %p721_p7 = pnand %p720_p6, %p862_p4 }
  0xf9   : > { %p726_p12 = por %p725_p11, %p724_p10 }
  0xfa   : > { %p722_p9 = pneg %p721_p7 }
  0xfc   : > { %p727_p13 = pnand %p726_p12, %p722_p9 }
  0xfe   : > { %730 = shalt.err (!%p727_p13)
}
  0xff   : > { %s785_s28 = smov 128   ;;  %s786_s30 = smov 8  }
 0x100   : > { %641 = dma.vmem_to_hbm [thread:$0]  (%p862_p4), %s912_s27, 256, %s910_s8, %s916_s12, %s785_s28, %s785_s28, %s786_s30  }
 0x101 PF: > { %p647_p0 = scmp.ge.s32.totalorder %s781_s26, 2  ;;  %s531_s24 = sand.u32 1, %s761_s21  }
 0x102   : > { %s532_s13 = scalar_lea.sflag [#allocation3], %s531_s24 }
 0x103   : > { %p644_p1 = pnand %p647_p0, %p869_p8 }
 0x105   : > { %p645_p2 = pneg %p644_p1 }
 0x107   : > { %756 = dma.done.wait (%p645_p2), %s532_s13, 256  }
 0x108   : > { %758 = vsyncadd (%p645_p2), %s532_s13, 4294967040  ;;  %s19_s26 = sadd.s32 1, %s781_s26   ;;  %s970_s21 = smov %s765_s22 }
 0x109   : > { %p16_p3 = scmp.ge.s32.totalorder %s19_s26, 4   ;;  %s971_s22 = smov %s769_s23 }
 0x10a   : > { %s972_s23 = smov %s875_s10  ;;  %s973_s24 = smov %s777_s25 }
 0x10b   : > { %s974_s25 = smov %s976_s29  ;;  %18 = sbr.rel (!%p16_p3) target bundleno = 4 (0x4), region = 82 }
 0x110   :  { %537 = vsyncpa [#allocation3], 1 }
 0x111   :  { %539 = vsyncpa [#allocation3 + $0x1], 1 }

</bundles_post_ra>
